<compile_context>
chip_gen: v6e
topology: v6e:2x2x1
jax: 0.10.0
libtpu: 0.0.40
codegen_flags: <defaults>
</compile_context>

<pallas_src>
import functools

import jax
import jax.numpy as jnp
from jax.experimental import pallas as pl
from jax.experimental.pallas import tpu as pltpu

LANE = 128  # TPU lane width; logits are padded up to a multiple of this.


# ----------------------------------------------------------------------------
# Kernel bodies
# ----------------------------------------------------------------------------
def _bdot(a, w):
    """bf16 x bf16 -> f32 MXU matmul (weights are pre-cast to bf16)."""
    return jnp.dot(a.astype(jnp.bfloat16), w, preferred_element_type=jnp.float32)


def _head_chain(x, w1, b1, w2, b2, w3, b3, w4p, b4p):
    """contrastive_head (3x Linear+ReLU) + supervised_head (Linear, lane-padded)."""
    h = jnp.maximum(_bdot(x, w1) + b1, 0.0)
    h = jnp.maximum(_bdot(h, w2) + b2, 0.0)
    feat = jnp.maximum(_bdot(h, w3) + b3, 0.0)            # hidden_feature
    logits = _bdot(feat, w4p) + b4p
    return feat, logits


def _backbone_block(x3d, wb, bb):
    """Global-avg-pool (XLU lane reduction, f32) + Linear + ReLU."""
    pooled = jnp.mean(x3d, axis=-1)                        # [bt, C]
    return jnp.maximum(_bdot(pooled, wb) + bb, 0.0)


def _backbone_kernel(x_ref, wb_ref, bb_ref, hidden_ref):
    """forward_pass='backbone': image -> backbone features."""
    hidden_ref[...] = _backbone_block(
        x_ref[...], wb_ref[...], bb_ref[...]).astype(hidden_ref.dtype)


def _head_logits_kernel(x_ref, w1_ref, b1_ref, w2_ref, b2_ref, w3_ref, b3_ref,
                        w4p_ref, b4p_ref, logits_ref):
    """forward_pass='head': backbone features -> logits."""
    _, logits = _head_chain(x_ref[...], w1_ref[...], b1_ref[...], w2_ref[...],
                            b2_ref[...], w3_ref[...], b3_ref[...],
                            w4p_ref[...], b4p_ref[...])
    logits_ref[...] = logits.astype(logits_ref.dtype)


def _fused_logits_kernel(x_ref, wb_ref, bb_ref, w1_ref, b1_ref, w2_ref, b2_ref,
                         w3_ref, b3_ref, w4p_ref, b4p_ref, logits_ref):
    """forward_pass='default': image -> logits (hidden never leaves VMEM)."""
    hidden = _backbone_block(x_ref[...], wb_ref[...], bb_ref[...])
    _, logits = _head_chain(hidden, w1_ref[...], b1_ref[...], w2_ref[...],
                            b2_ref[...], w3_ref[...], b3_ref[...],
                            w4p_ref[...], b4p_ref[...])
    logits_ref[...] = logits.astype(logits_ref.dtype)


def _fused_all_kernel(x_ref, wb_ref, bb_ref, w1_ref, b1_ref, w2_ref, b2_ref,
                      w3_ref, b3_ref, w4p_ref, b4p_ref, feat_ref, logits_ref):
    """forward_pass='return_all': image -> (features, logits)."""
    hidden = _backbone_block(x_ref[...], wb_ref[...], bb_ref[...])
    feat, logits = _head_chain(hidden, w1_ref[...], b1_ref[...], w2_ref[...],
                               b2_ref[...], w3_ref[...], b3_ref[...],
                               w4p_ref[...], b4p_ref[...])
    feat_ref[...] = feat.astype(feat_ref.dtype)
    logits_ref[...] = logits.astype(logits_ref.dtype)


# ----------------------------------------------------------------------------
# BlockSpec / grid helpers
# ----------------------------------------------------------------------------
def _tiled(bt, n):
    return pl.BlockSpec((bt, n), lambda i: (i, 0))


def _resident(shape):
    # Constant block index: the pipeliner DMAs these only once.
    # TODO(synk): pipeline_mode=pl.Buffered(1) would halve their VMEM footprint
    # (matters on v7x's 64 MiB); with the pool no longer folded into the weight
    # they total well under 1 MiB here, so default buffering is kept.
    return pl.BlockSpec(shape, lambda i: (0, 0))


def _round_up(n, m):
    return -(-n // m) * m


def _batch_tile(b):
    # Full-sublane (multiple-of-8) batch tiles, capped at 512 rows; when the
    # batch allows it, force >=2 grid steps so the "parallel" axis shards
    # across both v7x TensorCores.
    if b <= 8:
        return b
    return min(512, _round_up(_round_up(b, 2) // 2, 8))


def _nbytes(*arrays):
    return sum(int(a.size) * a.dtype.itemsize for a in arrays)


def _mk_compiler_params(tile_bytes, weight_bytes):
    # Double-buffered activation/output tiles + (double-buffered) resident
    # weights, with 2x headroom.  Never below the v6e scoped default (32 MiB),
    # never above v7x's 64 MiB physical VMEM.
    need = 2 * tile_bytes + 2 * weight_bytes
    limit = int(min(64 << 20, max(2 * need, 32 << 20)))
    return pltpu.CompilerParams(dimension_semantics=("parallel",),
                                vmem_limit_bytes=limit)


# ----------------------------------------------------------------------------
# One-time parameter packing (hoisted out of the per-call path)
# ----------------------------------------------------------------------------
def pack_params(params):
    """Pad the supervised head to a lane-dense width and cast matmul weights to
    bf16 (biases stay f32).  Returns (packed_dict, num_classes)."""
    w4, b4 = params["w4"], params["b4"]
    nc = w4.shape[1]
    pad = (-nc) % LANE
    packed = {
        "wb": params["wb"].astype(jnp.bfloat16), "bb": params["bb"],
        "w1": params["w1"].astype(jnp.bfloat16), "b1": params["b1"],
        "w2": params["w2"].astype(jnp.bfloat16), "b2": params["b2"],
        "w3": params["w3"].astype(jnp.bfloat16), "b3": params["b3"],
        "w4p": jnp.pad(w4, ((0, 0), (0, pad))).astype(jnp.bfloat16),
        "b4p": jnp.pad(b4, ((0, 0), (0, pad))),
    }
    return packed, nc


# ----------------------------------------------------------------------------
# pallas_call wrappers
# ----------------------------------------------------------------------------
def _run_backbone(x_img, packed):
    wb, bb = packed["wb"], packed["bb"]
    B, C, H, W = x_img.shape
    HW = H * W
    x3d = x_img.reshape(B, C, HW)
    bd = wb.shape[1]
    bt = _batch_tile(B)
    cp = _mk_compiler_params(tile_bytes=4 * bt * (C * HW + bd),
                             weight_bytes=_nbytes(wb, bb))
    return pl.pallas_call(
        _backbone_kernel,
        out_shape=jax.ShapeDtypeStruct((B, bd), jnp.float32),
        grid=(pl.cdiv(B, bt),),
        in_specs=[pl.BlockSpec((bt, C, HW), lambda i: (i, 0, 0)),
                  _resident(wb.shape), _resident(bb.shape)],
        out_specs=_tiled(bt, bd),
        compiler_params=cp,
        cost_estimate=pl.CostEstimate(
            flops=B * C * HW + 2 * B * C * bd, transcendentals=0,
            bytes_accessed=4 * (x3d.size + B * bd) + _nbytes(wb, bb)),
    )(x3d, wb, bb)


def _run_head_logits(hidden, packed, nc):
    weights = (packed["w1"], packed["b1"], packed["w2"], packed["b2"],
               packed["w3"], packed["b3"], packed["w4p"], packed["b4p"])
    w1, w3, w4p = packed["w1"], packed["w3"], packed["w4p"]
    B, bd = hidden.shape
    md, fd, ncp = w1.shape[1], w3.shape[1], w4p.shape[1]
    bt = _batch_tile(B)
    cp = _mk_compiler_params(tile_bytes=4 * bt * (bd + ncp),
                             weight_bytes=_nbytes(*weights))
    logits_p = pl.pallas_call(
        _head_logits_kernel,
        out_shape=jax.ShapeDtypeStruct((B, ncp), jnp.float32),
        grid=(pl.cdiv(B, bt),),
        in_specs=[_tiled(bt, bd)] + [_resident(a.shape) for a in weights],
        out_specs=_tiled(bt, ncp),
        compiler_params=cp,
        cost_estimate=pl.CostEstimate(
            flops=2 * B * (bd * md + md * md + md * fd + fd * ncp),
            transcendentals=0,
            bytes_accessed=4 * (hidden.size + B * ncp) + _nbytes(*weights)),
    )(hidden, *weights)
    return logits_p[:, :nc]     # padded columns are exactly zero


def _run_fused(x_img, packed, nc, want_features):
    """Single kernel: image -> (features?, logits).  No HBM round-trip of hidden."""
    wb, bb = packed["wb"], packed["bb"]
    weights = (packed["w1"], packed["b1"], packed["w2"], packed["b2"],
               packed["w3"], packed["b3"], packed["w4p"], packed["b4p"])
    w1, w3, w4p = packed["w1"], packed["w3"], packed["w4p"]
    B, C, H, W = x_img.shape
    HW = H * W
    x3d = x_img.reshape(B, C, HW)
    bd = wb.shape[1]
    md, fd, ncp = w1.shape[1], w3.shape[1], w4p.shape[1]
    bt = _batch_tile(B)

    all_weights = (wb, bb) + weights
    out_tile = ncp + (fd if want_features else 0)
    cp = _mk_compiler_params(tile_bytes=4 * bt * (C * HW + out_tile),
                             weight_bytes=_nbytes(*all_weights))
    flops = B * C * HW + 2 * B * (C * bd + bd * md + md * md + md * fd + fd * ncp)
    cost = pl.CostEstimate(
        flops=flops, transcendentals=0,
        bytes_accessed=4 * (x3d.size + B * out_tile) + _nbytes(*all_weights))

    in_specs = ([pl.BlockSpec((bt, C, HW), lambda i: (i, 0, 0))]
                + [_resident(a.shape) for a in all_weights])
    operands = (x3d,) + all_weights
    grid = (pl.cdiv(B, bt),)

    if want_features:
        feat, logits_p = pl.pallas_call(
            _fused_all_kernel,
            out_shape=(jax.ShapeDtypeStruct((B, fd), jnp.float32),
                       jax.ShapeDtypeStruct((B, ncp), jnp.float32)),
            grid=grid, in_specs=in_specs,
            out_specs=(_tiled(bt, fd), _tiled(bt, ncp)),
            compiler_params=cp, cost_estimate=cost,
        )(*operands)
        return feat, logits_p[:, :nc]

    logits_p = pl.pallas_call(
        _fused_logits_kernel,
        out_shape=jax.ShapeDtypeStruct((B, ncp), jnp.float32),
        grid=grid, in_specs=in_specs,
        out_specs=_tiled(bt, ncp),
        compiler_params=cp, cost_estimate=cost,
    )(*operands)
    return logits_p[:, :nc]


# ----------------------------------------------------------------------------
# Public forward, mirroring SupervisedModel.forward semantics
# ----------------------------------------------------------------------------
@functools.partial(jax.jit, static_argnames=("forward_pass", "num_classes"))
def supervised_model_forward(x, packed, forward_pass="default", num_classes=6):
    if forward_pass not in ("backbone", "head", "default", "return_all"):
        raise ValueError("Invalid forward pass {}".format(forward_pass))
    if forward_pass == "head":
        return _run_head_logits(x, packed, num_classes)
    if forward_pass == "backbone":
        return _run_backbone(x, packed)
    if forward_pass == "default":
        return _run_fused(x, packed, num_classes, want_features=False)
    feat, logits = _run_fused(x, packed, num_classes, want_features=True)
    return {"features": feat, "output": logits}


# ----------------------------------------------------------------------------
# Deterministic parameter init (PyTorch-nn.Linear-style uniform init)
# ----------------------------------------------------------------------------
def init_params(key, in_channels, backbone_dim, middle_dim, features_dim, num_classes):
    ks = jax.random.split(key, 10)

    def lin(kw, kb, fan_in, fan_out):
        s = 1.0 / jnp.sqrt(fan_in)
        w = jax.random.uniform(kw, (fan_in, fan_out), jnp.float32, -s, s)
        b = jax.random.uniform(kb, (1, fan_out), jnp.float32, -s, s)
        return w, b

    # TODO(synk): the real backbone CNN is injected at construction time in the
    # PyTorch module; synthesized here as global-avg-pool + Linear + ReLU.
    wb, bb = lin(ks[0], ks[1], in_channels, backbone_dim)
    w1, b1 = lin(ks[2], ks[3], backbone_dim, middle_dim)
    w2, b2 = lin(ks[4], ks[5], middle_dim, middle_dim)
    w3, b3 = lin(ks[6], ks[7], middle_dim, features_dim)
    w4, b4 = lin(ks[8], ks[9], features_dim, num_classes)
    return dict(wb=wb, bb=bb, w1=w1, b1=b1, w2=w2, b2=b2, w3=w3, b3=b3, w4=w4, b4=b4)


# ----------------------------------------------------------------------------
if __name__ == "__main__":
    key = jax.random.PRNGKey(0)
    kx, kp = jax.random.split(key)

    B, C, H, W = 2, 4, 16, 16
    backbone_dim, middle_dim, features_dim, num_classes = 128, 256, 128, 6

    x = jax.random.normal(kx, (B, C, H, W), jnp.float32)
    params = init_params(kp, C, backbone_dim, middle_dim, features_dim, num_classes)
    packed, nc = pack_params(params)          # one-time packing, outside the jit

    out_all = supervised_model_forward(x, packed, forward_pass="return_all", num_classes=nc)
    logits_default = supervised_model_forward(x, packed, forward_pass="default", num_classes=nc)
    hidden_bb = supervised_model_forward(x, packed, forward_pass="backbone", num_classes=nc)
    logits_head = supervised_model_forward(hidden_bb, packed, forward_pass="head", num_classes=nc)
    jax.block_until_ready((out_all, logits_default, hidden_bb, logits_head))

    # Pure-JAX reference with the same bf16-operand / f32-accumulate matmuls.
    def bdot(a, w):
        return jnp.dot(a.astype(jnp.bfloat16), w.astype(jnp.bfloat16),
                       preferred_element_type=jnp.float32)

    pooled = jnp.mean(x.reshape(B, C, H * W), axis=-1)
    hidden_ref = jnp.maximum(bdot(pooled, params["wb"]) + params["bb"], 0.0)
    h = jnp.maximum(bdot(hidden_ref, params["w1"]) + params["b1"], 0.0)
    h = jnp.maximum(bdot(h, params["w2"]) + params["b2"], 0.0)
    feat_ref = jnp.maximum(bdot(h, params["w3"]) + params["b3"], 0.0)
    logits_ref = bdot(feat_ref, params["w4"]) + params["b4"]

    assert out_all["features"].shape == (B, features_dim)
    assert out_all["output"].shape == (B, num_classes)
    assert logits_default.shape == (B, num_classes)
    assert hidden_bb.shape == (B, backbone_dim)
    assert logits_head.shape == (B, num_classes)

    tol = dict(atol=2e-3, rtol=2e-3)
    assert jnp.allclose(hidden_bb, hidden_ref, **tol)
    assert jnp.allclose(out_all["features"], feat_ref, **tol)
    assert jnp.allclose(out_all["output"], logits_ref, **tol)
    assert jnp.allclose(logits_default, logits_ref, **tol)
    assert jnp.allclose(logits_head, logits_ref, **tol)

    print("KERNEL_OK")
</pallas_src>

<mosaic_0001>
module attributes {stable_mosaic.version = 11 : i64} {
  func.func @_fused_all_kernel(%arg0: i32, %arg1: memref<2x4x256xf32, #tpu.memory_space<vmem>>, %arg2: memref<4x128xbf16, #tpu.memory_space<vmem>>, %arg3: memref<1x128xf32, #tpu.memory_space<vmem>>, %arg4: memref<128x256xbf16, #tpu.memory_space<vmem>>, %arg5: memref<1x256xf32, #tpu.memory_space<vmem>>, %arg6: memref<256x256xbf16, #tpu.memory_space<vmem>>, %arg7: memref<1x256xf32, #tpu.memory_space<vmem>>, %arg8: memref<256x128xbf16, #tpu.memory_space<vmem>>, %arg9: memref<1x128xf32, #tpu.memory_space<vmem>>, %arg10: memref<128x128xbf16, #tpu.memory_space<vmem>>, %arg11: memref<1x128xf32, #tpu.memory_space<vmem>>, %arg12: memref<2x128xf32, #tpu.memory_space<vmem>>, %arg13: memref<2x128xf32, #tpu.memory_space<vmem>>) attributes {dimension_semantics = [#tpu.dimension_semantics<parallel>], iteration_bounds = array<i64: 1>, scalar_prefetch = 0 : i64, scratch_operands = 0 : i64, tpu.core_type = #tpu.core_type<tc>, window_params = [{transform_indices = @transform_0, window_bounds = array<i64: 2, 4, 256>}, {pipeline_mode = #tpu.pipeline_mode<synchronous>, transform_indices = @transform_1, window_bounds = array<i64: 4, 128>}, {pipeline_mode = #tpu.pipeline_mode<synchronous>, transform_indices = @transform_2, window_bounds = array<i64: 1, 128>}, {pipeline_mode = #tpu.pipeline_mode<synchronous>, transform_indices = @transform_3, window_bounds = array<i64: 128, 256>}, {pipeline_mode = #tpu.pipeline_mode<synchronous>, transform_indices = @transform_4, window_bounds = array<i64: 1, 256>}, {pipeline_mode = #tpu.pipeline_mode<synchronous>, transform_indices = @transform_5, window_bounds = array<i64: 256, 256>}, {pipeline_mode = #tpu.pipeline_mode<synchronous>, transform_indices = @transform_6, window_bounds = array<i64: 1, 256>}, {pipeline_mode = #tpu.pipeline_mode<synchronous>, transform_indices = @transform_7, window_bounds = array<i64: 256, 128>}, {pipeline_mode = #tpu.pipeline_mode<synchronous>, transform_indices = @transform_8, window_bounds = array<i64: 1, 128>}, {pipeline_mode = #tpu.pipeline_mode<synchronous>, transform_indices = @transform_9, window_bounds = array<i64: 128, 128>}, {pipeline_mode = #tpu.pipeline_mode<synchronous>, transform_indices = @transform_10, window_bounds = array<i64: 1, 128>}, {transform_indices = @transform_11, window_bounds = array<i64: 2, 128>}, {transform_indices = @transform_12, window_bounds = array<i64: 2, 128>}]} {
    %c0 = arith.constant 0 : index
    %c0_0 = arith.constant 0 : index
    %c0_1 = arith.constant 0 : index
    %0 = vector.load %arg1[%c0, %c0_0, %c0_1] : memref<2x4x256xf32, #tpu.memory_space<vmem>>, vector<2x4x256xf32>
    %c0_2 = arith.constant 0 : index
    %c0_3 = arith.constant 0 : index
    %1 = vector.load %arg2[%c0_2, %c0_3] : memref<4x128xbf16, #tpu.memory_space<vmem>>, vector<4x128xbf16>
    %c0_4 = arith.constant 0 : index
    %c0_5 = arith.constant 0 : index
    %2 = vector.load %arg3[%c0_4, %c0_5] : memref<1x128xf32, #tpu.memory_space<vmem>>, vector<1x128xf32>
    %cst = arith.constant dense<0.000000e+00> : vector<2x4xf32>
    %3 = vector.multi_reduction <add>, %0, %cst [2] : vector<2x4x256xf32> to vector<2x4xf32>
    %cst_6 = arith.constant 2.560000e+02 : f32
    %4 = vector.broadcast %cst_6 : f32 to vector<2x4xf32>
    %5 = arith.divf %3, %4 : vector<2x4xf32>
    %6 = arith.truncf %5 : vector<2x4xf32> to vector<2x4xbf16>
    %cst_7 = arith.constant dense<0.000000e+00> : vector<2x128xf32>
    %7 = tpu.matmul %6, %1, %cst_7 {dimension_numbers = #tpu.dot_dimension_numbers<[1], [0], [0], [1], [0, 0, 1, 1], [], []>} : vector<2x4xbf16>, vector<4x128xbf16>, vector<2x128xf32> -> vector<2x128xf32>
    %8 = vector.broadcast %2 : vector<1x128xf32> to vector<2x128xf32>
    %9 = arith.addf %7, %8 : vector<2x128xf32>
    %cst_8 = arith.constant 0.000000e+00 : f32
    %10 = vector.broadcast %cst_8 : f32 to vector<2x128xf32>
    %11 = arith.maximumf %9, %10 : vector<2x128xf32>
    %c0_9 = arith.constant 0 : index
    %c0_10 = arith.constant 0 : index
    %12 = vector.load %arg4[%c0_9, %c0_10] : memref<128x256xbf16, #tpu.memory_space<vmem>>, vector<128x256xbf16>
    %c0_11 = arith.constant 0 : index
    %c0_12 = arith.constant 0 : index
    %13 = vector.load %arg5[%c0_11, %c0_12] : memref<1x256xf32, #tpu.memory_space<vmem>>, vector<1x256xf32>
    %c0_13 = arith.constant 0 : index
    %c0_14 = arith.constant 0 : index
    %14 = vector.load %arg6[%c0_13, %c0_14] : memref<256x256xbf16, #tpu.memory_space<vmem>>, vector<256x256xbf16>
    %c0_15 = arith.constant 0 : index
    %c0_16 = arith.constant 0 : index
    %15 = vector.load %arg7[%c0_15, %c0_16] : memref<1x256xf32, #tpu.memory_space<vmem>>, vector<1x256xf32>
    %c0_17 = arith.constant 0 : index
    %c0_18 = arith.constant 0 : index
    %16 = vector.load %arg8[%c0_17, %c0_18] : memref<256x128xbf16, #tpu.memory_space<vmem>>, vector<256x128xbf16>
    %c0_19 = arith.constant 0 : index
    %c0_20 = arith.constant 0 : index
    %17 = vector.load %arg9[%c0_19, %c0_20] : memref<1x128xf32, #tpu.memory_space<vmem>>, vector<1x128xf32>
    %c0_21 = arith.constant 0 : index
    %c0_22 = arith.constant 0 : index
    %18 = vector.load %arg10[%c0_21, %c0_22] : memref<128x128xbf16, #tpu.memory_space<vmem>>, vector<128x128xbf16>
    %c0_23 = arith.constant 0 : index
    %c0_24 = arith.constant 0 : index
    %19 = vector.load %arg11[%c0_23, %c0_24] : memref<1x128xf32, #tpu.memory_space<vmem>>, vector<1x128xf32>
    %20 = arith.truncf %11 : vector<2x128xf32> to vector<2x128xbf16>
    %cst_25 = arith.constant dense<0.000000e+00> : vector<2x256xf32>
    %21 = tpu.matmul %20, %12, %cst_25 {dimension_numbers = #tpu.dot_dimension_numbers<[1], [0], [0], [1], [0, 0, 1, 1], [], []>} : vector<2x128xbf16>, vector<128x256xbf16>, vector<2x256xf32> -> vector<2x256xf32>
    %22 = vector.broadcast %13 : vector<1x256xf32> to vector<2x256xf32>
    %23 = arith.addf %21, %22 : vector<2x256xf32>
    %cst_26 = arith.constant 0.000000e+00 : f32
    %24 = vector.broadcast %cst_26 : f32 to vector<2x256xf32>
    %25 = arith.maximumf %23, %24 : vector<2x256xf32>
    %26 = arith.truncf %25 : vector<2x256xf32> to vector<2x256xbf16>
    %cst_27 = arith.constant dense<0.000000e+00> : vector<2x256xf32>
    %27 = tpu.matmul %26, %14, %cst_27 {dimension_numbers = #tpu.dot_dimension_numbers<[1], [0], [0], [1], [0, 0, 1, 1], [], []>} : vector<2x256xbf16>, vector<256x256xbf16>, vector<2x256xf32> -> vector<2x256xf32>
    %28 = vector.broadcast %15 : vector<1x256xf32> to vector<2x256xf32>
    %29 = arith.addf %27, %28 : vector<2x256xf32>
    %cst_28 = arith.constant 0.000000e+00 : f32
    %30 = vector.broadcast %cst_28 : f32 to vector<2x256xf32>
    %31 = arith.maximumf %29, %30 : vector<2x256xf32>
    %32 = arith.truncf %31 : vector<2x256xf32> to vector<2x256xbf16>
    %cst_29 = arith.constant dense<0.000000e+00> : vector<2x128xf32>
    %33 = tpu.matmul %32, %16, %cst_29 {dimension_numbers = #tpu.dot_dimension_numbers<[1], [0], [0], [1], [0, 0, 1, 1], [], []>} : vector<2x256xbf16>, vector<256x128xbf16>, vector<2x128xf32> -> vector<2x128xf32>
    %34 = vector.broadcast %17 : vector<1x128xf32> to vector<2x128xf32>
    %35 = arith.addf %33, %34 : vector<2x128xf32>
    %cst_30 = arith.constant 0.000000e+00 : f32
    %36 = vector.broadcast %cst_30 : f32 to vector<2x128xf32>
    %37 = arith.maximumf %35, %36 : vector<2x128xf32>
    %38 = arith.truncf %37 : vector<2x128xf32> to vector<2x128xbf16>
    %cst_31 = arith.constant dense<0.000000e+00> : vector<2x128xf32>
    %39 = tpu.matmul %38, %18, %cst_31 {dimension_numbers = #tpu.dot_dimension_numbers<[1], [0], [0], [1], [0, 0, 1, 1], [], []>} : vector<2x128xbf16>, vector<128x128xbf16>, vector<2x128xf32> -> vector<2x128xf32>
    %40 = vector.broadcast %19 : vector<1x128xf32> to vector<2x128xf32>
    %41 = arith.addf %39, %40 : vector<2x128xf32>
    %c0_32 = arith.constant 0 : index
    %c0_33 = arith.constant 0 : index
    %42 = vector.load %arg12[%c0_32, %c0_33] : memref<2x128xf32, #tpu.memory_space<vmem>>, vector<2x128xf32>
    tpu.vector_store %arg12[%c0_32, %c0_33], %37 {strides = array<i32>} : memref<2x128xf32, #tpu.memory_space<vmem>>, vector<2x128xf32>,
    %c0_34 = arith.constant 0 : index
    %c0_35 = arith.constant 0 : index
    %43 = vector.load %arg13[%c0_34, %c0_35] : memref<2x128xf32, #tpu.memory_space<vmem>>, vector<2x128xf32>
    tpu.vector_store %arg13[%c0_34, %c0_35], %41 {strides = array<i32>} : memref<2x128xf32, #tpu.memory_space<vmem>>, vector<2x128xf32>,
    return
  }
  func.func @transform_0(%arg0: i32) -> (i32, i32, i32) {
    %c0_i32 = arith.constant 0 : i32
    %c0_i32_0 = arith.constant 0 : i32
    %c0_i32_1 = arith.constant 0 : i32
    return %arg0, %c0_i32, %c0_i32_0 : i32, i32, i32
  }
  func.func @transform_1(%arg0: i32) -> (i32, i32) {
    %c0_i32 = arith.constant 0 : i32
    %c0_i32_0 = arith.constant 0 : i32
    %c0_i32_1 = arith.constant 0 : i32
    return %c0_i32, %c0_i32_0 : i32, i32
  }
  func.func @transform_2(%arg0: i32) -> (i32, i32) {
    %c0_i32 = arith.constant 0 : i32
    %c0_i32_0 = arith.constant 0 : i32
    %c0_i32_1 = arith.constant 0 : i32
    return %c0_i32, %c0_i32_0 : i32, i32
  }
  func.func @transform_3(%arg0: i32) -> (i32, i32) {
    %c0_i32 = arith.constant 0 : i32
    %c0_i32_0 = arith.constant 0 : i32
    %c0_i32_1 = arith.constant 0 : i32
    return %c0_i32, %c0_i32_0 : i32, i32
  }
  func.func @transform_4(%arg0: i32) -> (i32, i32) {
    %c0_i32 = arith.constant 0 : i32
    %c0_i32_0 = arith.constant 0 : i32
    %c0_i32_1 = arith.constant 0 : i32
    return %c0_i32, %c0_i32_0 : i32, i32
  }
  func.func @transform_5(%arg0: i32) -> (i32, i32) {
    %c0_i32 = arith.constant 0 : i32
    %c0_i32_0 = arith.constant 0 : i32
    %c0_i32_1 = arith.constant 0 : i32
    return %c0_i32, %c0_i32_0 : i32, i32
  }
  func.func @transform_6(%arg0: i32) -> (i32, i32) {
    %c0_i32 = arith.constant 0 : i32
    %c0_i32_0 = arith.constant 0 : i32
    %c0_i32_1 = arith.constant 0 : i32
    return %c0_i32, %c0_i32_0 : i32, i32
  }
  func.func @transform_7(%arg0: i32) -> (i32, i32) {
    %c0_i32 = arith.constant 0 : i32
    %c0_i32_0 = arith.constant 0 : i32
    %c0_i32_1 = arith.constant 0 : i32
    return %c0_i32, %c0_i32_0 : i32, i32
  }
  func.func @transform_8(%arg0: i32) -> (i32, i32) {
    %c0_i32 = arith.constant 0 : i32
    %c0_i32_0 = arith.constant 0 : i32
    %c0_i32_1 = arith.constant 0 : i32
    return %c0_i32, %c0_i32_0 : i32, i32
  }
  func.func @transform_9(%arg0: i32) -> (i32, i32) {
    %c0_i32 = arith.constant 0 : i32
    %c0_i32_0 = arith.constant 0 : i32
    %c0_i32_1 = arith.constant 0 : i32
    return %c0_i32, %c0_i32_0 : i32, i32
  }
  func.func @transform_10(%arg0: i32) -> (i32, i32) {
    %c0_i32 = arith.constant 0 : i32
    %c0_i32_0 = arith.constant 0 : i32
    %c0_i32_1 = arith.constant 0 : i32
    return %c0_i32, %c0_i32_0 : i32, i32
  }
  func.func @transform_11(%arg0: i32) -> (i32, i32) {
    %c0_i32 = arith.constant 0 : i32
    %c0_i32_0 = arith.constant 0 : i32
    return %arg0, %c0_i32 : i32, i32
  }
  func.func @transform_12(%arg0: i32) -> (i32, i32) {
    %c0_i32 = arith.constant 0 : i32
    %c0_i32_0 = arith.constant 0 : i32
    return %arg0, %c0_i32 : i32, i32
  }
}

</mosaic_0001>

<bundles_post_ra>
// kernel: supervised_model_forward.1
= control target key start
LH: loop header
LB: loop body
LE: loop exit
PB: predicated region body
PF: predicated region fallthrough
CT: control target
= control target key end

     0   :  { %18 = vsyncpa [#allocation3], 0  ;;  %s1440_s0 = inlined_call_operand.vmem [shape: f32[2,4,256], index: 0, kind: input, shape index: {}]   ;;  %s1441_s1 = inlined_call_operand.vmem [shape: bf16[4,128], index: 1, kind: input, shape index: {}]   ;;  %s1442_s2 = inlined_call_operand.vmem [shape: f32[1,128], index: 2, kind: input, shape index: {}]   ;;  %s1443_s3 = inlined_call_operand.vmem [shape: bf16[128,256], index: 3, kind: input, shape index: {}]   ;;  %s1444_s4 = inlined_call_operand.vmem [shape: f32[1,256], index: 4, kind: input, shape index: {}]   ;;  %s1445_s5 = inlined_call_operand.hbm [shape: bf16[256,256], index: 5, kind: input, shape index: {}]   ;;  %s1446_s6 = inlined_call_operand.vmem [shape: f32[1,256], index: 6, kind: input, shape index: {}]   ;;  %s1447_s7 = inlined_call_operand.hbm [shape: bf16[256,128], index: 7, kind: input, shape index: {}]   ;;  %s1448_s8 = inlined_call_operand.vmem [shape: f32[1,128], index: 8, kind: input, shape index: {}]   ;;  %s1449_s9 = inlined_call_operand.hbm [shape: bf16[128,128], index: 9, kind: input, shape index: {}]   ;;  %s1450_s10 = inlined_call_operand.vmem [shape: f32[1,128], index: 10, kind: input, shape index: {}]   ;;  %s1451_s11 = inlined_call_operand.hbm [shape: f32[2,128], index: 11, kind: output, shape index: {0}]   ;;  %s1452_s12 = inlined_call_operand.hbm [shape: f32[2,128], index: 12, kind: output, shape index: {1}]  }
   0x1   :  { %19 = vsyncpa [#allocation6], 0 }
   0x2   :  { %20 = vsyncpa [#allocation4], 0 }
   0x3   :  { %21 = vsyncpa [#allocation10], 0  ;;  %s1258_s21 = smov [#allocation5]  }
   0x4   :  { %s51_s22 = sshll.u32 %s1258_s21, 4  ;;  %s52_s22 = int_to_ptr.vmem [resolvable:$true] %s51_s22 }
   0x5   :  { %s1158_s23 = scalar_lea.vmem %s52_s22, 2048  ;;  %p1163_p1 = scmp.lt.s32.totalorder %s52_s22, %s52_s22 }
   0x6   :  { %p1159_p0 = scmp.ne.s32.totalorder %s52_s22, %s1158_s23  ;;  %p1164_p2 = scmp.lt.s32.totalorder %s1158_s23, %s1158_s23 }
   0x8   :  { %p1165_p3 = por %p1164_p2, %p1163_p1 }
   0xa   :  { %p1166_p4 = pnand %p1165_p3, %p1159_p0 }
   0xc   :  { %1169 = shalt.err (!%p1166_p4)
}
   0xd   :  { %s1259_s24 = smov 64   ;;  %s1260_s25 = smov 4  }
   0xe   :  { %57 = dma.hbm_to_vmem [thread:$0]  %s1447_s7, 2048, %s52_s22, [#allocation6], %s1259_s24, %s1259_s24, %s1260_s25  }
   0xf   :  { %s1261_s28 = smov [#allocation2]  }
  0x10   :  { %s37_s29 = sshll.u32 %s1261_s28, 4  ;;  %s38_s29 = int_to_ptr.vmem [resolvable:$true] %s37_s29 }
  0x11   :  { %s1178_s30 = scalar_lea.vmem %s38_s29, 4096  ;;  %p1183_p6 = scmp.lt.s32.totalorder %s38_s29, %s38_s29 }
  0x12   :  { %p1179_p5 = scmp.ne.s32.totalorder %s38_s29, %s1178_s30  ;;  %p1184_p7 = scmp.lt.s32.totalorder %s1178_s30, %s1178_s30 }
  0x14   :  { %p1185_p8 = por %p1184_p7, %p1183_p6 }
  0x16   :  { %p1186_p9 = pnand %p1185_p8, %p1179_p5 }
  0x18   :  { %1189 = shalt.err (!%p1186_p9)
}
  0x19   :  { %s1262_s13 = smov 128   ;;  %s1263_s14 = smov 8  }
  0x1a   :  { %43 = dma.hbm_to_vmem [thread:$0]  %s1445_s5, 4096, %s38_s29, [#allocation3], %s1262_s13, %s1262_s13, %s1263_s14  }
  0x1b   :  { %s1264_s17 = smov [#allocation7]  }
  0x1c   :  { %s65_s18 = sshll.u32 %s1264_s17, 4  ;;  %s66_s18 = int_to_ptr.vmem [resolvable:$true] %s65_s18 }
  0x1d   :  { %s1198_s7 = scalar_lea.vmem %s66_s18, 1024  ;;  %p1203_p11 = scmp.lt.s32.totalorder %s66_s18, %s66_s18 }
  0x1e   :  { %p1199_p10 = scmp.ne.s32.totalorder %s66_s18, %s1198_s7  ;;  %p1204_p12 = scmp.lt.s32.totalorder %s1198_s7, %s1198_s7 }
  0x20   :  { %p1205_p13 = por %p1204_p12, %p1203_p11 }
  0x22   :  { %p1206_p0 = pnand %p1205_p13, %p1199_p10 }
  0x24   :  { %1209 = shalt.err (!%p1206_p0)
}
  0x25   :  { %71 = dma.hbm_to_vmem [thread:$0]  %s1449_s9, 1024, %s66_s18, [#allocation6], %s1259_s24, %s1259_s24, %s1260_s25  }
  0x26   :  { %1250 = dma.done.wait [#allocation3], 4096  }
  0x27   :  { %1251 = vsyncadd [#allocation3], 4294963200 }
  0x28   :  { %1252 = dma.done.wait [#allocation6], 3072  }
  0x29   :  { %1253 = vsyncadd [#allocation6], 4294964224  ;;  %vm94_vm0 = vcmask 1043456   ;;  %v84_v0 = vld [vmem:[%s1440_s0] sm:$0xff]  ;;  %v85_v1 = vld [vmem:[%s1440_s0 + $0x8] sm:$0xff]  ;;  %vm137_vm1 = vcmask 1041408   ;;  %v120_v26 = vlaneseq }
  0x2a   :  { %v90_v2 = vcombine.high %v84_v0, %v84_v0  ;;  %v95_v3 = vsel %vm94_vm0, %v84_v0, 0.0  ;;  %v91_v4 = vcombine.high %v85_v1, %v85_v1  ;;  %v100_v6 = vsel %vm94_vm0, %v85_v1, 0.0  ;;  %v86_v10 = vld [vmem:[%s1441_s1] sm:$0x3]  ;;  %v1054_v13 = vld [vmem:[%s1443_s3 + $0x74] ss:$8 sps:$4 sm:$0xff]  }
  0x2b   :  { %v1265_v11 = vmov 0.0   ;;  %v139_v12 = vsel %vm137_vm1, %v86_v10, 0  ;;  %vm1266_vm2 = vmmov 0   ;;  %v1056_v14 = vld [vmem:[%s1443_s3 + $0x70] ss:$8 sps:$4 sm:$0xff]   ;;  %374 = vmatprep.subr.bf16.mxu1 %v1054_v13  ;;  %v121_v29 = vand.u32 127, %v120_v26 }
  0x2c   :  { %v96_v5 = vsel %vm94_vm0, %v90_v2, 0.0  ;;  %v101_v7 = vsel %vm94_vm0, %v91_v4, 0.0  ;;  %1014 = vmatprep.subr.bf16.mxu0 %v1265_v11  ;;  %1016 = vmatprep.mubr.msk.bf16.mxu0 %vm1266_vm2, %v1265_v11  ;;  %v1057_v15 = vld [vmem:[%s1443_s3 + $0x64] ss:$8 sps:$4 sm:$0xff]   ;;  %v1059_v16 = vld [vmem:[%s1443_s3 + $0x60] ss:$8 sps:$4 sm:$0xff]  }
  0x2d   :  { %v97_v8 = vadd.f32 %v96_v5, %v95_v3  ;;  %v102_v9 = vadd.f32 %v101_v7, %v100_v6  ;;  %1015 = vmatpush3.bf16.msra.mxu0 %v139_v12  ;;  %375 = vmatpush1.bf16.msra.mxu1 %v1056_v14  ;;  %v1060_v17 = vld [vmem:[%s1443_s3 + $0x54] ss:$8 sps:$4 sm:$0xff]   ;;  %v1062_v18 = vld [vmem:[%s1443_s3 + $0x50] ss:$8 sps:$4 sm:$0xff]   ;;  %v1063_v19 = vld [vmem:[%s1443_s3 + $0x44] ss:$8 sps:$4 sm:$0xff]  }
  0x2e   :  { %376 = vmatprep.subr.bf16.mxu1 %v1057_v15  ;;  %v1065_v20 = vld [vmem:[%s1443_s3 + $0x40] ss:$8 sps:$4 sm:$0xff]   ;;  %v1066_v21 = vld [vmem:[%s1443_s3 + $0x34] ss:$8 sps:$4 sm:$0xff]   ;;  %v1068_v22 = vld [vmem:[%s1443_s3 + $0x30] ss:$8 sps:$4 sm:$0xff]  }
  0x2f   :  { %98 = vadd.xlane.f32.xlu0 %v97_v8  ;;  %v1069_v23 = vld [vmem:[%s1443_s3 + $0x24] ss:$8 sps:$4 sm:$0xff]   ;;  %v1071_v24 = vld [vmem:[%s1443_s3 + $0x20] ss:$8 sps:$4 sm:$0xff]   ;;  %v1072_v25 = vld [vmem:[%s1443_s3 + $0x14] ss:$8 sps:$4 sm:$0xff]  }
  0x30   :  { %v1395_v30 = vshrl.u32 %v120_v26, 7  ;;  %vm130_vm3 = vcmask 1041409   ;;  %vm133_vm4 = vcmask 31744   ;;  %v1074_v42 = vld [vmem:[%s1443_s3 + $0x10] ss:$8 sps:$4 sm:$0xff]   ;;  %v1267_v45 = vmov 0  }
  0x31   :  { %377 = vmatpush1.bf16.msra.mxu1 %v1059_v16  ;;  %v1075_v43 = vld [vmem:[%s1443_s3 + $0x4] ss:$8 sps:$4 sm:$0xff]   ;;  %v1077_v44 = vld [vmem:[%s1443_s3] ss:$8 sps:$4 sm:$0xff]   ;;  %406 = vmatprep.mubr.bf16.mxu1 %v1267_v45  ;;  %v1078_v46 = vld [vmem:[#allocation2 + $0x70] ss:$8 sps:$4 sm:$0xff]  }
  0x32   :  { %378 = vmatprep.subr.bf16.mxu1 %v1060_v17  ;;  %v124_v34 = vsub.s32 %v121_v29, %v1395_v30  ;;  %v1080_v47 = vld [vmem:[#allocation2 + $0x74] ss:$8 sps:$4 sm:$0xff]   ;;  %v1083_v48 = vld [vmem:[#allocation2 + $0x64] ss:$8 sps:$4 sm:$0xff]   ;;  %v1081_v49 = vld [vmem:[#allocation2 + $0x60] ss:$8 sps:$4 sm:$0xff]  }
  0x33   :  { %103 = vadd.xlane.f32.xlu0 %v102_v9  ;;  %590 = vmatprep.subr.bf16.mxu0 %v1080_v47  ;;  %v1086_v50 = vld [vmem:[#allocation2 + $0x54] ss:$8 sps:$4 sm:$0xff]   ;;  %v1084_v51 = vld [vmem:[#allocation2 + $0x50] ss:$8 sps:$4 sm:$0xff]   ;;  %v1089_v52 = vld [vmem:[#allocation2 + $0x44] ss:$8 sps:$4 sm:$0xff]  }
  0x34   :  { %v1087_v53 = vld [vmem:[#allocation2 + $0x40] ss:$8 sps:$4 sm:$0xff]   ;;  %v1092_v54 = vld [vmem:[#allocation2 + $0x34] ss:$8 sps:$4 sm:$0xff]   ;;  %v1090_v55 = vld [vmem:[#allocation2 + $0x30] ss:$8 sps:$4 sm:$0xff]  }
  0x35   :  { %379 = vmatpush1.bf16.msra.mxu1 %v1062_v18  ;;  %v1095_v56 = vld [vmem:[#allocation2 + $0x24] ss:$8 sps:$4 sm:$0xff]   ;;  %v1093_v57 = vld [vmem:[#allocation2 + $0x20] ss:$8 sps:$4 sm:$0xff]   ;;  %v1098_v58 = vld [vmem:[#allocation2 + $0x14] ss:$8 sps:$4 sm:$0xff]  }
  0x36   :  { %380 = vmatprep.subr.bf16.mxu1 %v1063_v19  ;;  %v1096_v59 = vld [vmem:[#allocation2 + $0x10] ss:$8 sps:$4 sm:$0xff]   ;;  %v1101_v60 = vld [vmem:[#allocation2 + $0x4] ss:$8 sps:$4 sm:$0xff]   ;;  %v1099_v61 = vld [vmem:[#allocation2] ss:$8 sps:$4 sm:$0xff]  }
  0x37   :  { %v1104_v62 = vld [vmem:[#allocation2 + $0xf4] ss:$8 sps:$4 sm:$0xff]   ;;  %v1102_v63 = vld [vmem:[#allocation2 + $0xf0] ss:$8 sps:$4 sm:$0xff]   ;;  %v1107_v0 = vld [vmem:[#allocation2 + $0xe4] ss:$8 sps:$4 sm:$0xff]  }
  0x38   :  { %v1105_v1 = vld [vmem:[#allocation2 + $0xe0] ss:$8 sps:$4 sm:$0xff]   ;;  %v1110_v2 = vld [vmem:[#allocation2 + $0xd4] ss:$8 sps:$4 sm:$0xff]   ;;  %v1108_v3 = vld [vmem:[#allocation2 + $0xd0] ss:$8 sps:$4 sm:$0xff]  }
  0x39   :  { %381 = vmatpush1.bf16.msra.mxu1 %v1065_v20  ;;  %v1113_v4 = vld [vmem:[#allocation2 + $0xc4] ss:$8 sps:$4 sm:$0xff]   ;;  %v1111_v5 = vld [vmem:[#allocation2 + $0xc0] ss:$8 sps:$4 sm:$0xff]   ;;  %v1116_v6 = vld [vmem:[#allocation2 + $0xb4] ss:$8 sps:$4 sm:$0xff]  }
  0x3a   :  { %382 = vmatprep.subr.bf16.mxu1 %v1066_v21  ;;  %v1114_v7 = vld [vmem:[#allocation2 + $0xb0] ss:$8 sps:$4 sm:$0xff]   ;;  %v1119_v8 = vld [vmem:[#allocation2 + $0xa4] ss:$8 sps:$4 sm:$0xff]   ;;  %v1117_v9 = vld [vmem:[#allocation2 + $0xa0] ss:$8 sps:$4 sm:$0xff]  }
  0x3b   :  { %v905_v10 = vld [vmem:[%s1442_s2] ss:$0 sm:$0xff]  ;;  %v1122_v19 = vld [vmem:[#allocation2 + $0x94] ss:$8 sps:$4 sm:$0xff]   ;;  %v1120_v20 = vld [vmem:[#allocation2 + $0x90] ss:$8 sps:$4 sm:$0xff]  }
  0x3c   :  { %v1125_v21 = vld [vmem:[#allocation2 + $0x84] ss:$8 sps:$4 sm:$0xff]   ;;  %v1129_v26 = vld [vmem:[#allocation5 + $0x30] sm:$0xff]   ;;  %s1268_s18 = smov [#allocation8]  }
  0x3d   :  { %383 = vmatpush1.bf16.msra.mxu1 %v1068_v22  ;;  %v1123_v22 = vld [vmem:[#allocation2 + $0x80] ss:$8 sps:$4 sm:$0xff]   ;;  %s881_s7 = sshll.u32 %s1268_s18, 4  ;;  %s882_s7 = int_to_ptr.vmem [resolvable:$true] %s881_s7 }
  0x3e   :  { %384 = vmatprep.subr.bf16.mxu1 %v1069_v23  ;;  %v1126_v23 = vld [vmem:[#allocation5 + $0x78] sm:$0xff]   ;;  %v1132_v29 = vld [vmem:[#allocation5 + $0x60] sm:$0xff]   ;;  %s1210_s19 = scalar_lea.vmem %s882_s7, 32  ;;  %p1215_p2 = scmp.lt.s32.totalorder %s882_s7, %s882_s7 }
  0x3f   :  { %p1211_p1 = scmp.ne.s32.totalorder %s882_s7, %s1210_s19  ;;  %p1216_p3 = scmp.lt.s32.totalorder %s1210_s19, %s1210_s19 }
  0x41   :  { %385 = vmatpush1.bf16.msra.mxu1 %v1071_v24  ;;  %v1127_v24 = vld [vmem:[#allocation5 + $0x38] sm:$0xff]   ;;  %p1217_p4 = por %p1216_p3, %p1215_p2 }
  0x42   :  { %386 = vmatprep.subr.bf16.mxu1 %v1072_v25  ;;  %v1128_v25 = vld [vmem:[#allocation5 + $0x70] sm:$0xff]  }
  0x43   :  { %p1218_p5 = pnand %p1217_p4, %p1211_p1 }
  0x45   :  { %387 = vmatpush1.bf16.msra.mxu1 %v1074_v42 }
  0x46   :  { %388 = vmatprep.subr.bf16.mxu1 %v1075_v43 }
  0x49   :  { %389 = vmatpush1.bf16.msra.mxu1 %v1077_v44 }
  0x4a   :  { %983 = vmatprep.subr.bf16.mxu1 %v1126_v23 }
  0xb8   :  { %v99_v27 = vpop.xlane.xlu0 %98 }
  0xb9   :  { %v106_v28 = vmul.f32 0.00390625, %v99_v27  ;;  %v1130_v27 = vld [vmem:[#allocation5 + $0x68] sm:$0xff]  }
  0xbb   :  { %v108_v31 = vpack.c.bf16 %v106_v28, %v106_v28  ;;  %v1131_v28 = vld [vmem:[#allocation5 + $0x28] sm:$0xff]  }
  0xbc   :  { %v104_v32 = vpop.xlane.xlu0 %103 }
  0xbd   :  { %v107_v33 = vmul.f32 0.00390625, %v104_v32  ;;  %v118_v35 = vunpack.c.l.b16 %v108_v31  ;;  %v1133_v31 = vld [vmem:[#allocation5 + $0x20] sm:$0xff]   ;;  %v1134_v32 = vld [vmem:[#allocation5 + $0x58] sm:$0xff]  }
  0xbf   :  { %v109_v36 = vpack.c.bf16 %v107_v33, %v107_v33  ;;  %v125_v38 = vrot.slane %v118_v35, %v124_v34  ;;  %v1135_v33 = vld [vmem:[#allocation5 + $0x18] sm:$0xff]   ;;  %v1137_v35 = vld [vmem:[#allocation5 + $0x10] sm:$0xff]  }
  0xc1   :  { %v119_v37 = vunpack.c.l.b16 %v109_v36  ;;  %v286_v36 = vsub.s32 0, %v1395_v30 }
  0xc3   :  { %v129_v39 = vrot.slane %v119_v37, %v124_v34  ;;  %v1136_v34 = vld [vmem:[#allocation5 + $0x50] sm:$0xff]   ;;  %v198_v37 = vld [vmem:[%s1444_s4] sm:$0x3] }
  0xc5   :  { %v131_v40 = vsel %vm130_vm3, %v129_v39, %v125_v38  ;;  %v290_v38 = vsub.s32 1, %v1395_v30  ;;  %v287_v39 = vrot.slane %v198_v37, %v286_v36  ;;  %v1141_v30 = vld [vmem:[#allocation5] sm:$0xff]  }
  0xc6   :  { %v132_v41 = vpack.c.b16 %v131_v40, %v131_v40 }
  0xc7   :  { %v291_v40 = vrot.slane %v198_v37, %v290_v38 }
  0xc8   :  { %1017 = vmatmul.mubr.msk.bf16.vlgmr.msra.gmra.mxu0 %vm133_vm4, %v132_v41 }
  0xc9   :  { %591 = vmatpush1.bf16.msra.mxu0 %v1078_v46 }
  0xca   :  { %592 = vmatprep.subr.bf16.mxu0 %v1083_v48 }
  0xcd   :  { %593 = vmatpush1.bf16.msra.mxu0 %v1081_v49 }
  0xce   :  { %594 = vmatprep.subr.bf16.mxu0 %v1086_v50 }
  0xd1   :  { %595 = vmatpush1.bf16.msra.mxu0 %v1084_v51  ;;  %v1138_v51 = vld [vmem:[#allocation5 + $0x48] sm:$0xff]  }
  0xd2   :  { %596 = vmatprep.subr.bf16.mxu0 %v1089_v52  ;;  %v1139_v52 = vld [vmem:[#allocation5 + $0x8] sm:$0xff]  }
  0xd5   :  { %597 = vmatpush1.bf16.msra.mxu0 %v1087_v53  ;;  %v1140_v53 = vld [vmem:[#allocation5 + $0x40] sm:$0xff]  }
  0xd6   :  { %598 = vmatprep.subr.bf16.mxu0 %v1092_v54  ;;  %v231_v54 = vld [vmem:[%s1446_s6] sm:$0x3] }
  0xd9   :  { %599 = vmatpush1.bf16.msra.mxu0 %v1090_v55  ;;  %v423_v55 = vrot.slane %v231_v54, %v286_v36 }
  0xda   :  { %600 = vmatprep.subr.bf16.mxu0 %v1095_v56  ;;  %v427_v56 = vrot.slane %v231_v54, %v290_v38 }
  0xdd   :  { %601 = vmatpush1.bf16.msra.mxu0 %v1093_v57 }
  0xde   :  { %602 = vmatprep.subr.bf16.mxu0 %v1098_v58 }
  0xe1   :  { %603 = vmatpush1.bf16.msra.mxu0 %v1096_v59 }
  0xe2   :  { %604 = vmatprep.subr.bf16.mxu0 %v1101_v60 }
  0xe5   :  { %605 = vmatpush1.bf16.msra.mxu0 %v1099_v61 }
  0xe6   :  { %606 = vmatprep.subr.bf16.mxu0 %v1104_v62 }
  0xe9   :  { %607 = vmatpush2.bf16.msra.mxu0 %v1102_v63 }
  0xea   :  { %608 = vmatprep.subr.bf16.mxu0 %v1107_v0 }
  0xed   :  { %609 = vmatpush2.bf16.msra.mxu0 %v1105_v1 }
  0xee   :  { %610 = vmatprep.subr.bf16.mxu0 %v1110_v2  ;;  %v1142_v2 = vld [vmem:[#allocation7 + $0x38] sm:$0xff]  }
  0xf1   :  { %611 = vmatpush2.bf16.msra.mxu0 %v1108_v3 }
  0xf2   :  { %612 = vmatprep.subr.bf16.mxu0 %v1113_v4  ;;  %v1143_v4 = vld [vmem:[#allocation7 + $0x30] sm:$0xff]  }
  0xf5   :  { %613 = vmatpush2.bf16.msra.mxu0 %v1111_v5  ;;  %v1144_v5 = vld [vmem:[#allocation7 + $0x28] sm:$0xff]  }
  0xf6   :  { %614 = vmatprep.subr.bf16.mxu0 %v1116_v6  ;;  %v1145_v6 = vld [vmem:[#allocation7 + $0x20] sm:$0xff]  }
  0xf9   :  { %615 = vmatpush2.bf16.msra.mxu0 %v1114_v7  ;;  %v1146_v7 = vld [vmem:[#allocation7 + $0x18] sm:$0xff]  }
  0xfa   :  { %616 = vmatprep.subr.bf16.mxu0 %v1119_v8  ;;  %v1147_v8 = vld [vmem:[#allocation7 + $0x10] sm:$0xff]  }
  0xfd   :  { %617 = vmatpush2.bf16.msra.mxu0 %v1117_v9  ;;  %v1148_v9 = vld [vmem:[#allocation7 + $0x8] sm:$0xff]  }
  0xfe   :  { %618 = vmatprep.subr.bf16.mxu0 %v1122_v19 }
 0x101   :  { %619 = vmatpush2.bf16.msra.mxu0 %v1120_v20 }
 0x102   :  { %620 = vmatprep.subr.bf16.mxu0 %v1125_v21 }
 0x105   :  { %621 = vmatpush2.bf16.msra.mxu0 %v1123_v22 }
 0x188   :  { %v175_v12 = vpop.f32.mrf.mxu0 }
 0x189   :  { %v176_v13 = vadd.f32 %v905_v10, %v175_v12  ;;  %v1149_v10 = vld [vmem:[#allocation7] sm:$0xff]  }
 0x18a   :  { %v1018_v14 = vpop.f32.mrf.mxu0 }
 0x18b   :  { %v181_v15 = vmax.f32 %v176_v13, 0.0  ;;  %v955_v13 = vld [vmem:[%s1448_s8] ss:$0 sm:$0xff] }
 0x18c   :  { %v178_v16 = vpop.f32.mrf.mxu0 }
 0x18d   :  { %v282_v17 = vpack.c.bf16 %v181_v15, %v181_v15 }
 0x18e   :  { %v1019_v18 = vpop.f32.mrf.mxu0 }
 0x18f   :  { %407 = vmatmul.mubr.bf16.vlgmr.msra.gmra.mxu1 %v282_v17 }
 0x190   :  { %984 = vmatpush3.bf16.msra.mxu1 %v1127_v24 }
 0x191   :  { %985 = vmatprep.subr.bf16.mxu1 %v1128_v25 }
 0x194   :  { %986 = vmatpush3.bf16.msra.mxu1 %v1129_v26 }
 0x195   :  { %987 = vmatprep.subr.bf16.mxu1 %v1130_v27 }
 0x198   :  { %988 = vmatpush3.bf16.msra.mxu1 %v1131_v28 }
 0x199   :  { %989 = vmatprep.subr.bf16.mxu1 %v1132_v29 }
 0x19c   :  { %990 = vmatpush3.bf16.msra.mxu1 %v1133_v31 }
 0x19d   :  { %991 = vmatprep.subr.bf16.mxu1 %v1134_v32 }
 0x1a0   :  { %992 = vmatpush3.bf16.msra.mxu1 %v1135_v33 }
 0x1a1   :  { %993 = vmatprep.subr.bf16.mxu1 %v1136_v34 }
 0x1a4   :  { %994 = vmatpush3.bf16.msra.mxu1 %v1137_v35 }
 0x1a5   :  { %995 = vmatprep.subr.bf16.mxu1 %v1138_v51 }
 0x1a8   :  { %996 = vmatpush3.bf16.msra.mxu1 %v1139_v52 }
 0x1a9   :  { %997 = vmatprep.subr.bf16.mxu1 %v1140_v53 }
 0x1ac   :  { %998 = vmatpush3.bf16.msra.mxu1 %v1141_v30 }
 0x1ad   :  { %1020 = vmatprep.subr.bf16.mxu1 %v1265_v11 }
 0x24f   :  { %v408_v41 = vpop.f32.mrf.mxu1 }
 0x250   :  { %v409_v42 = vadd.f32 %v408_v41, %v287_v39 }
 0x251   :  { %v410_v43 = vpop.f32.mrf.mxu1 }
 0x252   :  { %v411_v44 = vadd.f32 %v410_v43, %v291_v40  ;;  %v415_v45 = vmax.f32 %v409_v42, 0.0 }
 0x253   :  { %v412_v46 = vpop.f32.mrf.mxu1 }
 0x254   :  { %v416_v47 = vmax.f32 %v411_v44, 0.0  ;;  %v417_v50 = vpack.c.bf16 %v415_v45, %v415_v45 }
 0x255   :  { %v413_v48 = vpop.f32.mrf.mxu1 }
 0x256   :  { %v418_v49 = vpack.c.bf16 %v416_v47, %v416_v47 }
 0x258   :  { %622 = vmatprep.mubr.bf16.mxu0 %v418_v49 }
 0x259   :  { %623 = vmatmul.mubr.bf16.vlgmr.msra.gmra.mxu0 %v417_v50 }
 0x319   :  { %v624_v57 = vpop.f32.mrf.mxu0 }
 0x31a   :  { %v625_v58 = vadd.f32 %v624_v57, %v423_v55 }
 0x31b   :  { %v626_v59 = vpop.f32.mrf.mxu0 }
 0x31c   :  { %v627_v60 = vadd.f32 %v626_v59, %v427_v56  ;;  %v631_v61 = vmax.f32 %v625_v58, 0.0 }
 0x31d   :  { %v628_v62 = vpop.f32.mrf.mxu0 }
 0x31e   :  { %v632_v63 = vmax.f32 %v627_v60, 0.0  ;;  %v633_v3 = vpack.c.bf16 %v631_v61, %v631_v61 }
 0x31f   :  { %v629_v0 = vpop.f32.mrf.mxu0 }
 0x320   :  { %v634_v1 = vpack.c.bf16 %v632_v63, %v632_v63 }
 0x322   :  { %769 = vmatprep.mubr.bf16.mxu1 %v634_v1 }
 0x323   :  { %770 = vmatmul.mubr.bf16.vlgmr.msra.gmra.mxu1 %v633_v3 }
 0x324   :  { %1021 = vmatpush3.bf16.msra.mxu1 %v1142_v2  ;;  %1036 = vmatprep.mubr.msk.bf16.mxu1 %vm1266_vm2, %v1265_v11 }
 0x325   :  { %1022 = vmatprep.subr.bf16.mxu1 %v1265_v11 }
 0x328   :  { %1023 = vmatpush3.bf16.msra.mxu1 %v1143_v4 }
 0x329   :  { %1024 = vmatprep.subr.bf16.mxu1 %v1265_v11 }
 0x32c   :  { %1025 = vmatpush3.bf16.msra.mxu1 %v1144_v5 }
 0x32d   :  { %1026 = vmatprep.subr.bf16.mxu1 %v1265_v11 }
 0x330   :  { %1027 = vmatpush3.bf16.msra.mxu1 %v1145_v6 }
 0x331   :  { %1028 = vmatprep.subr.bf16.mxu1 %v1265_v11 }
 0x334   :  { %1029 = vmatpush3.bf16.msra.mxu1 %v1146_v7 }
 0x335   :  { %1030 = vmatprep.subr.bf16.mxu1 %v1265_v11 }
 0x338   :  { %1031 = vmatpush3.bf16.msra.mxu1 %v1147_v8 }
 0x339   :  { %1032 = vmatprep.subr.bf16.mxu1 %v1265_v11 }
 0x33c   :  { %1033 = vmatpush3.bf16.msra.mxu1 %v1148_v9 }
 0x33d   :  { %1034 = vmatprep.subr.bf16.mxu1 %v1265_v11 }
 0x340   :  { %1035 = vmatpush3.bf16.msra.mxu1 %v1149_v10 }
 0x3e3   :  { %v999_v12 = vpop.f32.mrf.mxu1 }
 0x3e5   :  { %v1000_v14 = vpop.f32.mrf.mxu1 }
 0x3e6   :  { %v1001_v15 = vadd.f32 %v1000_v14, %v999_v12 }
 0x3e7   :  { %v1002_v16 = vpop.f32.mrf.mxu1 }
 0x3e8   :  { %v772_v17 = vadd.f32 %v1001_v15, %v955_v13 }
 0x3e9   :  { %v1003_v18 = vpop.f32.mrf.mxu1 }
 0x3ea   :  { %v777_v19 = vmax.f32 %v772_v17, 0.0 }
 0x3ec   :  { %v778_v20 = vpack.c.bf16 %v777_v19, %v777_v19  ;;  %873 = vst [vmem:[#allocation8] sm:$0x3] %v777_v19 }
 0x3ee   :  { %1037 = vmatmul.mubr.bf16.vlgmr.msra.gmra.mxu1 %v778_v20 }
 0x3ef   :  { %1221 = shalt.err (!%p1218_p5)
}
 0x3f0   :  { %884 = dma.vmem_to_hbm [thread:$0]  %s882_s7, 32, %s1451_s11, [#allocation4]   ;;  %v972_v11 = vld [vmem:[%s1450_s10] ss:$0 sm:$0xff] }
 0x3f1   :  { %s1269_s22 = smov [#allocation9]  }
 0x3f2   :  { %s891_s23 = sshll.u32 %s1269_s22, 4  ;;  %s892_s23 = int_to_ptr.vmem [resolvable:$true] %s891_s23 }
 0x3f3   :  { %s1230_s9 = scalar_lea.vmem %s892_s23, 32  ;;  %p1235_p7 = scmp.lt.s32.totalorder %s892_s23, %s892_s23 }
 0x3f4   :  { %p1231_p6 = scmp.ne.s32.totalorder %s892_s23, %s1230_s9  ;;  %p1236_p8 = scmp.lt.s32.totalorder %s1230_s9, %s1230_s9 }
 0x3f6   :  { %p1237_p9 = por %p1236_p8, %p1235_p7 }
 0x3f8   :  { %p1238_p10 = pnand %p1237_p9, %p1231_p6 }
 0x4ae   :  { %v867_v21 = vpop.f32.mrf.mxu1 }
 0x4af   :  { %v868_v22 = vadd.f32 %v972_v11, %v867_v21 }
 0x4b0   :  { %v1038_v23 = vpop.f32.mrf.mxu1 }
 0x4b1   :  { %874 = vst [vmem:[#allocation9] sm:$0x3] %v868_v22 }
 0x4b2   :  { %v870_v24 = vpop.f32.mrf.mxu1 }
 0x4b3   :  { %1241 = shalt.err (!%p1238_p10)
}
 0x4b4   :  { %894 = dma.vmem_to_hbm [thread:$0]  %s892_s23, 32, %s1452_s12, [#allocation10]   ;;  %v1039_v25 = vpop.f32.mrf.mxu1 }
 0x4b5   :  { %1254 = dma.done.wait [#allocation4], 32  }
 0x4b6   :  { %1255 = vsyncadd [#allocation4], 4294967264 }
 0x4b7   :  { %1256 = dma.done.wait [#allocation10], 32  }
 0x4b8   :  { %1257 = vsyncadd [#allocation10], 4294967264 }
 0x4b9   :  { %901 = vsyncpa [#allocation3], 1 }
 0x4ba   :  { %902 = vsyncpa [#allocation6], 1 }
 0x4bb   :  { %903 = vsyncpa [#allocation4], 1 }
 0x4bc   :  { %904 = vsyncpa [#allocation10], 1 }

</bundles_post_ra>
